<compile_context>
chip_gen: v7x
topology: tpu7x:2x2x1
jax: 0.10.0
libtpu: 0.0.40
codegen_flags: <defaults>
</compile_context>

<pallas_src>
import functools

import jax
import jax.numpy as jnp
import numpy as np
from jax.experimental import pallas as pl
from jax.experimental.pallas import tpu as pltpu


def _vmem_limit_bytes():
    """Generation-aware scoped-VMEM budget (half of physical, capped at 64 MiB)."""
    try:
        cap = int(pltpu.get_tpu_info().vmem_capacity_bytes)
    except Exception:
        cap = 64 * 1024 * 1024          # conservative (v7x-sized) fallback
    return int(min(cap // 2, 64 * 1024 * 1024))


def _choose_tile_n(c, preds_itemsize, vmem_limit):
    """Rows per grid step, sized against the real VMEM working set.

    Per-row footprint (bytes):
      2 * C * itemsize   double-buffered preds input block
      3 * C * 4          f32 intermediates (cast, shifted, exp)
      2 * 128 * 4        packed (N,4) side block, lane-padded to 128, x2 buffers
    """
    per_row = 2 * c * preds_itemsize + 3 * c * 4 + 2 * 128 * 4
    budget = (vmem_limit * 6) // 10     # headroom for output / compiler scratch
    t = budget // max(1, per_row)
    t = int(max(8, min(t, 32 * 1024)))
    return (t // 8) * 8


def _comp_loss_kernel(side_ref, preds_ref, out_ref, *,
                      c_bce, c_ce, c_prod, do_mean, n_rows):
    # preds block: (TILE_N, C); cast to f32 in-kernel (HBM DMA stays in the
    # input dtype, e.g. bf16).
    preds = preds_ref[...].astype(jnp.float32)
    side = side_ref[...]                                  # (TILE_N, 4) f32
    labels = side[:, 0:1].astype(jnp.int32)               # exact for ids < 2**24
    gam = side[:, 1:2]
    sup = side[:, 2:3]
    scl = side[:, 3:4]

    tile_n = preds.shape[0]
    row = jax.lax.broadcasted_iota(jnp.int32, (tile_n, 1), 0)
    valid = (pl.program_id(0) * tile_n + row) < n_rows    # tail-tile row mask

    # ---- CrossEntropyLoss(reduction='none') with integer class labels ----
    # ce_i = logsumexp(preds_i) - preds_i[label_i]   (fused one-hot gather)
    col = jax.lax.broadcasted_iota(jnp.int32, preds.shape, 1)
    picked = jnp.sum(jnp.where(col == labels, preds, 0.0),
                     axis=-1, keepdims=True)               # (TILE_N, 1)
    m = jnp.max(preds, axis=-1, keepdims=True)
    lse = m + jnp.log(jnp.sum(jnp.exp(preds - m), axis=-1, keepdims=True))
    ce = lse - picked                                      # (TILE_N, 1)

    # ---- BCEWithLogitsLoss(reduction='none'), numerically stable form ----
    bce = jnp.maximum(gam, 0.0) - gam * sup + jnp.log1p(jnp.exp(-jnp.abs(gam)))

    # ---- composite loss * scale; kill undefined tail rows with where() ----
    comp = (c_bce * bce + c_ce * ce + c_prod * (bce * ce)) * scl
    comp = jnp.where(valid, comp, 0.0)

    if do_mean:
        part = jnp.sum(comp)                               # per-tile partial sum
        out_ref[...] = jnp.full(out_ref.shape, part, jnp.float32)
    else:
        out_ref[...] = comp


def comp_loss(preds, labels, gammas, sup_labels, scale=1,
              *, consts, reduction='mean', tile_n=None):
    """JAX/Pallas equivalent of CompLoss.forward.

    preds:      (N, C) float logits (any float dtype; cast to f32 in-kernel)
    labels:     (N,)   int class indices
    gammas:     (N,)   float logits
    sup_labels: (N,) or scalar float targets in {0, 1}
    scale:      scalar or (N,) float
    """
    if reduction not in ('mean', 'none'):
        raise ValueError('Unknown reduction type.')
    do_mean = reduction == 'mean'

    preds = jnp.asarray(preds)
    N, C = preds.shape

    # Pack per-sample side data into one (N, 4) f32 array: one DMA per tile
    # instead of four lane-sparse (N, 1) arrays.
    labels_f = jnp.asarray(labels).astype(jnp.float32).reshape(N)
    gam = jnp.asarray(gammas, jnp.float32).reshape(N)
    sup = jnp.broadcast_to(jnp.asarray(sup_labels, jnp.float32), (N,))
    scl = jnp.broadcast_to(jnp.asarray(scale, jnp.float32), (N,))
    side = jnp.stack([labels_f, gam, sup, scl], axis=-1)   # (N, 4)

    vmem_limit = _vmem_limit_bytes()
    if tile_n is None:
        tile_n = _choose_tile_n(C, jnp.dtype(preds.dtype).itemsize, vmem_limit)

    if N <= tile_n:
        tile_n = N                      # single full-array block (always legal)
    else:
        tile_n = max(8, (tile_n // 8) * 8)
    num_tiles = pl.cdiv(N, tile_n)

    kernel = functools.partial(
        _comp_loss_kernel,
        c_bce=float(consts['bce']),
        c_ce=float(consts['ce']),
        c_prod=float(consts['prod']),
        do_mean=do_mean,
        n_rows=N,
    )

    in_specs = [
        pl.BlockSpec((tile_n, 4), lambda i: (i, 0)),       # packed side data
        pl.BlockSpec((tile_n, C), lambda i: (i, 0)),       # logits (orig dtype)
    ]
    if do_mean:
        # One partial sum per grid step -> 'parallel' axis (2 TCs on v7x),
        # finished with jnp.sum in the wrapper (also better f32 accuracy).
        out_shape = jax.ShapeDtypeStruct((num_tiles, 1, 1), jnp.float32)
        out_spec = pl.BlockSpec((1, 1, 1), lambda i: (i, 0, 0))
    else:
        # Tile-aligned output so every block store is fully in-bounds; the
        # (at most tile_n-1) padded rows are zero and sliced off below.
        out_rows = num_tiles * tile_n
        out_shape = jax.ShapeDtypeStruct((out_rows, 1), jnp.float32)
        out_spec = pl.BlockSpec((tile_n, 1), lambda i: (i, 0))

    out = pl.pallas_call(
        kernel,
        grid=(num_tiles,),
        in_specs=in_specs,
        out_specs=out_spec,
        out_shape=out_shape,
        compiler_params=pltpu.CompilerParams(
            dimension_semantics=("parallel",),
            vmem_limit_bytes=vmem_limit,
        ),
    )(side, preds)

    if do_mean:
        return jnp.sum(out) / N
    return out[:N, 0]


def _comp_loss_ref(preds, labels, gammas, sup_labels, scale, consts, reduction):
    """Pure-JAX reference for verification."""
    logits = jnp.asarray(preds).astype(jnp.float32)
    n = logits.shape[0]
    lse = jax.nn.logsumexp(logits, axis=-1)
    picked = jnp.take_along_axis(
        logits, jnp.asarray(labels).astype(jnp.int32)[:, None], axis=-1)[:, 0]
    ce = lse - picked
    x = jnp.asarray(gammas, jnp.float32).reshape(n)
    y = jnp.broadcast_to(jnp.asarray(sup_labels, jnp.float32), (n,))
    bce = jnp.maximum(x, 0.0) - x * y + jnp.log1p(jnp.exp(-jnp.abs(x)))
    comp = consts['bce'] * bce + consts['ce'] * ce + consts['prod'] * bce * ce
    comp = comp * jnp.broadcast_to(jnp.asarray(scale, jnp.float32), (n,))
    return jnp.mean(comp) if reduction == 'mean' else comp


if __name__ == "__main__":
    key = jax.random.PRNGKey(0)
    keys = jax.random.split(key, 8)

    consts = {'bce': 0.5, 'ce': 1.0, 'prod': 0.25}

    # 1) Small single-tile case, scalar scale, mean reduction.
    N, C = 8, 32
    preds = jax.random.normal(keys[0], (N, C), dtype=jnp.float32)
    labels = jax.random.randint(keys[1], (N,), 0, C, dtype=jnp.int32)
    gammas = jax.random.normal(keys[2], (N,), dtype=jnp.float32)
    sup_labels = jax.random.bernoulli(keys[3], 0.5, (N,)).astype(jnp.float32)

    loss = comp_loss(preds, labels, gammas, sup_labels, scale=1,
                     consts=consts, reduction='mean')
    jax.block_until_ready(loss)
    np.testing.assert_allclose(
        np.asarray(loss),
        np.asarray(_comp_loss_ref(preds, labels, gammas, sup_labels, 1,
                                  consts, 'mean')),
        rtol=1e-4, atol=1e-5)

    # 2) 'none' reduction, per-sample scale, bf16 logits passed straight through.
    scale_vec = jnp.linspace(0.5, 1.5, N, dtype=jnp.float32)
    preds_bf16 = preds.astype(jnp.bfloat16)
    loss_none = comp_loss(preds_bf16, labels, gammas, sup_labels,
                          scale=scale_vec, consts=consts, reduction='none')
    jax.block_until_ready(loss_none)
    np.testing.assert_allclose(
        np.asarray(loss_none),
        np.asarray(_comp_loss_ref(preds_bf16, labels, gammas, sup_labels,
                                  scale_vec, consts, 'none')),
        rtol=1e-4, atol=1e-4)

    # 3) Multi-tile path with a partial (un-padded) tail tile, forced small tile.
    N2, C2 = 40, 32
    preds2 = jax.random.normal(keys[4], (N2, C2), dtype=jnp.float32)
    labels2 = jax.random.randint(keys[5], (N2,), 0, C2, dtype=jnp.int32)
    gammas2 = jax.random.normal(keys[6], (N2,), dtype=jnp.float32)
    sup2 = jax.random.bernoulli(keys[7], 0.5, (N2,)).astype(jnp.float32)

    loss2 = comp_loss(preds2, labels2, gammas2, sup2, scale=1,
                      consts=consts, reduction='mean', tile_n=16)
    jax.block_until_ready(loss2)
    np.testing.assert_allclose(
        np.asarray(loss2),
        np.asarray(_comp_loss_ref(preds2, labels2, gammas2, sup2, 1,
                                  consts, 'mean')),
        rtol=1e-4, atol=1e-5)

    # 3b) same shapes, 'none' reduction (exercises tail masking + output slice).
    loss2n = comp_loss(preds2, labels2, gammas2, sup2, scale=1,
                       consts=consts, reduction='none', tile_n=16)
    jax.block_until_ready(loss2n)
    np.testing.assert_allclose(
        np.asarray(loss2n),
        np.asarray(_comp_loss_ref(preds2, labels2, gammas2, sup2, 1,
                                  consts, 'none')),
        rtol=1e-4, atol=1e-5)

    print("KERNEL_OK")
</pallas_src>

<mosaic_0001>
module attributes {stable_mosaic.version = 11 : i64} {
  func.func @_comp_loss_kernel(%arg0: i32, %arg1: memref<8x4xf32, #tpu.memory_space<vmem>>, %arg2: memref<8x32xf32, #tpu.memory_space<vmem>>, %arg3: memref<1x1x1xf32, #tpu.memory_space<vmem>>) attributes {dimension_semantics = [#tpu.dimension_semantics<parallel>], iteration_bounds = array<i64: 1>, scalar_prefetch = 0 : i64, scratch_operands = 0 : i64, tpu.core_type = #tpu.core_type<tc>, window_params = [{transform_indices = @transform_0, window_bounds = array<i64: 8, 4>}, {transform_indices = @transform_1, window_bounds = array<i64: 8, 32>}, {transform_indices = @transform_2, window_bounds = array<i64: 1, 1, 1>}]} {
    %c0 = arith.constant 0 : index
    %c0_0 = arith.constant 0 : index
    %0 = vector.load %arg2[%c0, %c0_0] : memref<8x32xf32, #tpu.memory_space<vmem>>, vector<8x32xf32>
    %c0_1 = arith.constant 0 : index
    %c0_2 = arith.constant 0 : index
    %1 = vector.load %arg1[%c0_1, %c0_2] : memref<8x4xf32, #tpu.memory_space<vmem>>, vector<8x4xf32>
    %2 = vector.extract_strided_slice %1 {offsets = [0, 0], sizes = [8, 1], strides = [1, 1]} : vector<8x4xf32> to vector<8x1xf32>
    %3 = arith.fptosi %2 : vector<8x1xf32> to vector<8x1xi32>
    %4 = vector.extract_strided_slice %1 {offsets = [0, 1], sizes = [8, 1], strides = [1, 1]} : vector<8x4xf32> to vector<8x1xf32>
    %5 = vector.extract_strided_slice %1 {offsets = [0, 2], sizes = [8, 1], strides = [1, 1]} : vector<8x4xf32> to vector<8x1xf32>
    %6 = vector.extract_strided_slice %1 {offsets = [0, 3], sizes = [8, 1], strides = [1, 1]} : vector<8x4xf32> to vector<8x1xf32>
    %7 = tpu.iota {dimensions = array<i32: 0>} : vector<8x1xi32>
    %c8_i32 = arith.constant 8 : i32
    %8 = arith.muli %arg0, %c8_i32 : i32
    %9 = vector.broadcast %8 : i32 to vector<8x1xi32>
    %10 = arith.addi %9, %7 : vector<8x1xi32>
    %c8_i32_3 = arith.constant 8 : i32
    %11 = vector.broadcast %c8_i32_3 : i32 to vector<8x1xi32>
    %12 = arith.cmpi slt, %10, %11 : vector<8x1xi32>
    %13 = tpu.iota {dimensions = array<i32: 1>} : vector<8x32xi32>
    %14 = vector.broadcast %3 : vector<8x1xi32> to vector<8x32xi32>
    %15 = arith.cmpi eq, %13, %14 : vector<8x32xi32>
    %cst = arith.constant 0.000000e+00 : f32
    %16 = vector.broadcast %cst : f32 to vector<8x32xf32>
    %17 = arith.select %15, %0, %16 : vector<8x32xi1>, vector<8x32xf32>
    %cst_4 = arith.constant dense<0.000000e+00> : vector<8xf32>
    %18 = vector.multi_reduction <add>, %17, %cst_4 [1] : vector<8x32xf32> to vector<8xf32>
    %19 = vector.shape_cast %18 : vector<8xf32> to vector<8x1xf32>
    %cst_5 = arith.constant dense<0xFF800000> : vector<8xf32>
    %20 = vector.multi_reduction <maximumf>, %0, %cst_5 [1] : vector<8x32xf32> to vector<8xf32>
    %21 = vector.shape_cast %20 : vector<8xf32> to vector<8x1xf32>
    %22 = vector.broadcast %21 : vector<8x1xf32> to vector<8x32xf32>
    %23 = arith.subf %0, %22 : vector<8x32xf32>
    %24 = math.exp %23 : vector<8x32xf32>
    %cst_6 = arith.constant dense<0.000000e+00> : vector<8xf32>
    %25 = vector.multi_reduction <add>, %24, %cst_6 [1] : vector<8x32xf32> to vector<8xf32>
    %26 = vector.shape_cast %25 : vector<8xf32> to vector<8x1xf32>
    %27 = math.log %26 : vector<8x1xf32>
    %28 = arith.addf %21, %27 : vector<8x1xf32>
    %29 = arith.subf %28, %19 : vector<8x1xf32>
    %cst_7 = arith.constant 0.000000e+00 : f32
    %30 = vector.broadcast %cst_7 : f32 to vector<8x1xf32>
    %31 = arith.maximumf %4, %30 : vector<8x1xf32>
    %32 = arith.mulf %4, %5 : vector<8x1xf32>
    %33 = arith.subf %31, %32 : vector<8x1xf32>
    %34 = math.absf %4 : vector<8x1xf32>
    %cst_8 = arith.constant 0.000000e+00 : f32
    %35 = vector.broadcast %cst_8 : f32 to vector<8x1xf32>
    %36 = arith.subf %35, %34 : vector<8x1xf32>
    %37 = math.exp %36 : vector<8x1xf32>
    %38 = math.log1p %37 : vector<8x1xf32>
    %39 = arith.addf %33, %38 : vector<8x1xf32>
    %cst_9 = arith.constant 5.000000e-01 : f32
    %40 = vector.broadcast %cst_9 : f32 to vector<8x1xf32>
    %41 = arith.mulf %40, %39 : vector<8x1xf32>
    %cst_10 = arith.constant 1.000000e+00 : f32
    %42 = vector.broadcast %cst_10 : f32 to vector<8x1xf32>
    %43 = arith.mulf %42, %29 : vector<8x1xf32>
    %44 = arith.addf %41, %43 : vector<8x1xf32>
    %45 = arith.mulf %39, %29 : vector<8x1xf32>
    %cst_11 = arith.constant 2.500000e-01 : f32
    %46 = vector.broadcast %cst_11 : f32 to vector<8x1xf32>
    %47 = arith.mulf %46, %45 : vector<8x1xf32>
    %48 = arith.addf %44, %47 : vector<8x1xf32>
    %49 = arith.mulf %48, %6 : vector<8x1xf32>
    %cst_12 = arith.constant 0.000000e+00 : f32
    %50 = vector.broadcast %cst_12 : f32 to vector<8x1xf32>
    %51 = arith.select %12, %49, %50 : vector<8x1xi1>, vector<8x1xf32>
    %52 = vector.shape_cast %51 : vector<8x1xf32> to vector<1x8x1xf32>
    %cst_13 = arith.constant dense<0.000000e+00> : vector<1xf32>
    %53 = vector.multi_reduction <add>, %52, %cst_13 [1, 2] : vector<1x8x1xf32> to vector<1xf32>
    %54 = vector.shape_cast %53 : vector<1xf32> to vector<1x1x1xf32>
    %55 = vector.extract %54[0, 0, 0] : f32 from vector<1x1x1xf32>
    %56 = vector.broadcast %55 : f32 to vector<1x1x1xf32>
    %c0_14 = arith.constant 0 : index
    %c0_15 = arith.constant 0 : index
    %c0_16 = arith.constant 0 : index
    %57 = vector.load %arg3[%c0_14, %c0_15, %c0_16] : memref<1x1x1xf32, #tpu.memory_space<vmem>>, vector<1x1x1xf32>
    tpu.vector_store %arg3[%c0_14, %c0_15, %c0_16], %56 {strides = array<i32>} : memref<1x1x1xf32, #tpu.memory_space<vmem>>, vector<1x1x1xf32>,
    return
  }
  func.func @transform_0(%arg0: i32) -> (i32, i32) {
    %c0_i32 = arith.constant 0 : i32
    %c0_i32_0 = arith.constant 0 : i32
    return %arg0, %c0_i32 : i32, i32
  }
  func.func @transform_1(%arg0: i32) -> (i32, i32) {
    %c0_i32 = arith.constant 0 : i32
    %c0_i32_0 = arith.constant 0 : i32
    return %arg0, %c0_i32 : i32, i32
  }
  func.func @transform_2(%arg0: i32) -> (i32, i32, i32) {
    %c0_i32 = arith.constant 0 : i32
    %c0_i32_0 = arith.constant 0 : i32
    %c0_i32_1 = arith.constant 0 : i32
    return %arg0, %c0_i32, %c0_i32_0 : i32, i32, i32
  }
}

</mosaic_0001>

<bundles_post_ra>
// kernel: tpu_custom_call.1
= control target key start
LH: loop header
LB: loop body
LE: loop exit
PB: predicated region body
PF: predicated region fallthrough
CT: control target
= control target key end

     0   :  { %vm28_vm0 = vcmask 261120   ;;  %s191_s0 = inlined_call_operand.vmem [shape: f32[8,4], index: 0, kind: input, shape index: {}]   ;;  %s192_s1 = inlined_call_operand.vmem [shape: f32[8,32], index: 1, kind: input, shape index: {}]   ;;  %s193_s2 = inlined_call_operand.hbm [shape: f32[1,1,1], index: 2, kind: output, shape index: {}]  }
   0x1   :  { %v12_v0 = vld [vmem:[%s192_s1] sm:$0xff] }
   0x2   :  { %7 = vsyncpa [#allocation3], 0  ;;  %v32_v1 = vsel %vm28_vm0, %v12_v0, -inf  ;;  %v149_v2 = vmov 0   ;;  %v13_v3 = vld [vmem:[%s191_s0] sm:$0xff]  ;;  %v21_v8 = vlaneseq  ;;  %s150_s0 = smov 127  }
   0x3   :  { %116 = vset.pattern.permute.xlu0 %v149_v2  ;;  %v108_v4 = vtrunc.f32 %v13_v3  ;;  %s151_s1 = smov 126   ;;  %v52_v16 = vand.u32 2147483647, %v13_v3  ;;  %v45_v27 = vmax.f32 %v13_v3, 0.0  ;;  %vm80_vm3 = vcmask 7168   ;;  %s152_s13 = smov [#allocation2]  }
   0x4   :  { %33 = vmax.xlane.f32.xlu0 %v32_v1  ;;  %v22_v10 = vand.u32 127, %v21_v8  ;;  %s100_s14 = sshll.u32 %s152_s13, 4  ;;  %vm92_vm4 = vcmask 0   ;;  %s101_s14 = int_to_ptr.vmem [resolvable:$true] %s100_s14 }
   0x5   :  { %v109_v5 = vcvt.f32.s32 %v108_v4  ;;  %v53_v17 = vsub.f32 0.0, %v52_v16  ;;  %s125_s16 = scalar_lea.vmem %s101_s14, 16  ;;  %s129_s17 = scalar_lea.vmem %s101_s14, 32 }
   0x6   :  { %p126_p0 = scmp.ne.s32.totalorder %s101_s14, %s125_s16  ;;  %p130_p1 = scmp.lt.s32.totalorder %s101_s14, %s101_s14 }
   0x7   :  { %v54_v18 = vmul.f32 1.442695, %v53_v17  ;;  %p131_p2 = scmp.lt.s32.totalorder %s129_s17, %s125_s16 }
   0x9   :  { %p132_p3 = por %p131_p2, %p130_p1 }
   0xb   :  { %p133_p4 = pnand %p132_p3, %p126_p0 }
  0x1a   :  { %24 = vperm.xlu0 %116, %v109_v5  }
  0x91   :  { %v34_v6 = vpop.xlane.xlu0 %33 }
  0x92   :  { %v35_v7 = vsub.f32 %v12_v0, %v34_v6 }
  0x94   :  { %v36_v9 = vmul.f32 1.442695, %v35_v7 }
  0x96   :  { %117 = vpow2.f32 %v36_v9 }
  0x97   :  { %119 = vpow2.f32 %v54_v18 }
  0x99   :  { %v25_v11 = vpop.permute.xlu0 %24 }
  0x9a   :  { %vm26_vm1 = vcmp.eq.s32.totalorder %v22_v10, %v25_v11 }
  0x9b   :  { %v27_v12 = vsel %vm26_vm1, %v12_v0, 0.0 }
  0x9c   :  { %v29_v13 = vsel %vm28_vm0, %v27_v12, 0.0 }
  0x9d   :  { %30 = vadd.xlane.f32.xlu1 %v29_v13 }
  0xa0   :  { %v118_v14 = vpop.eup %117 }
  0xa1   :  { %v38_v15 = vsel %vm28_vm0, %v118_v14, 0.0  ;;  %v120_v19 = vpop.eup %119 }
  0xa2   :  { %39 = vadd.xlane.f32.xlu1 %v38_v15  ;;  %v56_v20 = vadd.f32 1.0, %v120_v19  ;;  %v59_v22 = vmul.f32 -0.5, %v120_v19  ;;  %v62_v26 = vand.u32 2147483647, %v120_v19 }
  0xa4   :  { %121 = vlog2.f32 %v56_v20  ;;  %v60_v24 = vadd.f32 1.0, %v59_v22  ;;  %vm63_vm2 = vcmp.lt.f32.partialorder %v62_v26, 0.0004427343 }
  0xa6   :  { %v61_v30 = vmul.f32 %v120_v19, %v60_v24 }
  0xae   :  { %v122_v25 = vpop.eup %121 }
  0xaf   :  { %v58_v29 = vmul.f32 0.6931472, %v122_v25 }
  0xb1   :  { %v64_v33 = vsel %vm63_vm2, %v61_v30, %v58_v29 }
  0xb3   :  { %47 = vrot.lane.b32.xlu1 %v13_v3, %s150_s0 }
  0xb7   :  { %71 = vrot.lane.b32.xlu1 %v13_v3, %s151_s1 }
 0x12a   :  { %v31_v21 = vpop.xlane.xlu1 %30 }
 0x12f   :  { %v40_v23 = vpop.xlane.xlu1 %39 }
 0x130   :  { %123 = vlog2.f32 %v40_v23 }
 0x133   :  { %v48_v28 = vpop.permute.xlu1 %47 }
 0x134   :  { %v50_v31 = vmul.f32 %v48_v28, %v13_v3 }
 0x136   :  { %v51_v32 = vsub.f32 %v45_v27, %v50_v31 }
 0x137   :  { %v72_v43 = vpop.permute.xlu1 %71 }
 0x138   :  { %v65_v36 = vadd.f32 %v64_v33, %v51_v32 }
 0x13a   :  { %v124_v34 = vpop.eup %123  ;;  %v66_v39 = vmul.f32 0.5, %v65_v36 }
 0x13b   :  { %v42_v35 = vmul.f32 0.6931472, %v124_v34 }
 0x13d   :  { %v43_v37 = vadd.f32 %v42_v35, %v34_v6 }
 0x13f   :  { %v44_v38 = vsub.f32 %v43_v37, %v31_v21 }
 0x141   :  { %v68_v40 = vmul.f32 %v65_v36, %v44_v38  ;;  %v67_v41 = vadd.f32 %v66_v39, %v44_v38 }
 0x143   :  { %v69_v42 = vmul.f32 0.25, %v68_v40 }
 0x145   :  { %v70_v44 = vadd.f32 %v69_v42, %v67_v41 }
 0x147   :  { %v74_v45 = vmul.f32 %v72_v43, %v70_v44 }
 0x149   :  { %77 = vrot.lane.b32.xlu1 %v74_v45, %s150_s0 }
 0x1bb   :  { %v78_v46 = vpop.permute.xlu1 %77 }
 0x1bc   :  { %v81_v47 = vsel %vm80_vm3, %v78_v46, 0.0 }
 0x1bd   :  { %82 = vadd.xlane.f32.xlu1 %v81_v47 }
 0x24a   :  { %v83_v48 = vpop.xlane.xlu1 %82 }
 0x24b   :  { %v84_v49 = vrot.slane %v83_v48, 4 }
 0x24d   :  { %v85_v50 = vadd.f32 %v84_v49, %v83_v48 }
 0x24f   :  { %v86_v51 = vrot.slane %v85_v50, 2 }
 0x251   :  { %v87_v52 = vadd.f32 %v86_v51, %v85_v50 }
 0x253   :  { %v88_v53 = vrot.slane %v87_v52, 1 }
 0x255   :  { %v89_v54 = vadd.f32 %v88_v53, %v87_v52 }
 0x257   :  { %110 = vpush %v89_v54 }
 0x288   :  { %s111_s15 = spop %110 }
 0x289   :  { %v91_v55 = vstv %s111_s15 }
 0x28a   :  { %93 = vst.msk [vmem:[#allocation2] sm:$0x1] %vm92_vm4, %v91_v55 }
 0x28b   :  { %136 = shalt.err (!%p133_p4)
}
 0x28c   :  { %s137_s20 = scalar_lea.hbm %s193_s2, 16 }
 0x28d   :  { %p138_p5 = scmp.ne.s32.totalorder %s193_s2, %s137_s20  ;;  %p141_p6 = scmp.lt.u32.totalorder %s137_s20, %s193_s2 }
 0x28f   :  { %p143_p7 = pnand %p141_p6, %p138_p5 }
 0x291   :  { %146 = shalt.err (!%p143_p7)
}
 0x292   :  { %103 = dma.vmem_to_hbm [thread:$0]  %s101_s14, 16, %s193_s2, [#allocation3]  }
 0x293   :  { %147 = dma.done.wait [#allocation3], 16  }
 0x294   :  { %148 = vsyncadd [#allocation3], 4294967280 }
 0x295   :  { %107 = vsyncpa [#allocation3], 1 }

</bundles_post_ra>
